<compile_context>
chip_gen: v7x
topology: tpu7x:2x2x1
jax: 0.10.0
libtpu: 0.0.40
codegen_flags: <defaults>
</compile_context>

<pallas_src>
import jax
import jax.numpy as jnp
from jax.experimental import pallas as pl
from jax.experimental.pallas import tpu as pltpu

_LANE = 128            # hidden-dim lane padding (bump to 256 only if a wide hidden layer
                       # ever becomes MXU-bound on v6e/v7x; irrelevant for small heads).
_SLACK = 4 << 20
_BIG_FIRST_LAYER_BYTES = 4 << 20   # first-layer weights above this get their in-dim padded
                                   # to 128 so the K-tiled streaming path is usable.


def _round_up(n: int, m: int) -> int:
    return ((n + m - 1) // m) * m


def _vmem_budget_bytes() -> int:
    """Generation-aware usable-VMEM cap (~56 MiB on v7x's 64 MiB/TC, ~112 MiB on v5e/v6e)."""
    try:
        cap = int(pltpu.get_tpu_info().vmem_capacity_bytes)
    except Exception:
        cap = 64 << 20                      # conservative default (v7x-sized)
    return max(32 << 20, (cap * 7) // 8)


def _make_fused_kernel(num_layers: int):
    """Linear(->ReLU->Dropout)* -> Linear for one batch tile; all weights VMEM-resident."""

    def kernel(x_ref, *refs):
        # refs = (w0, b0, w1, b1, ..., o_ref); weights are (in, out), biases (1, out) f32.
        o_ref = refs[-1]
        h = x_ref[...]                       # x stays f32 in HBM; cast happens in VMEM below.
        for layer in range(num_layers):
            w = refs[2 * layer][...]
            b = refs[2 * layer + 1][...]
            # MXU matmul with f32 accumulation; bias-add / ReLU stay in f32 vregs.
            # bf16 path: per-layer f32->bf16 re-quantization before each dot (documented).
            h = jnp.dot(h.astype(w.dtype), w, preferred_element_type=jnp.float32) + b
            if layer != num_layers - 1:
                h = jnp.maximum(h, 0.0)
                # nn.Dropout: identity in eval mode.
                # TODO(synk): training-mode dropout (pltpu.prng_* Bernoulli mask) not implemented.
        o_ref[...] = h.astype(o_ref.dtype)

    return kernel


def _make_ktiled_kernel(num_layers: int):
    """Same head, but the FIRST layer's weight is streamed over a K (reduction) grid axis
    with an f32 accumulator scratch; the remaining (small) layers run at the last K step."""

    def kernel(x_ref, *refs):
        # refs = (w0, b0, w1, b1, ..., o_ref, acc_ref)
        o_ref, acc_ref = refs[-2], refs[-1]
        w0, b0 = refs[0], refs[1]
        k = pl.program_id(1)

        @pl.when(k == 0)
        def _init():
            acc_ref[...] = jnp.zeros_like(acc_ref)

        acc_ref[...] += jnp.dot(x_ref[...].astype(w0.dtype), w0[...],
                                preferred_element_type=jnp.float32)

        @pl.when(k == pl.num_programs(1) - 1)
        def _finalize():
            h = acc_ref[...] + b0[...]
            for layer in range(1, num_layers):
                h = jnp.maximum(h, 0.0)       # ReLU (+ eval-mode dropout = identity)
                w = refs[2 * layer][...]
                b = refs[2 * layer + 1][...]
                h = jnp.dot(h.astype(w.dtype), w, preferred_element_type=jnp.float32) + b
            o_ref[...] = h.astype(o_ref.dtype)

    return kernel


def init_classifier_linear_params(key, in_ch, layers_description, num_classes):
    """Synthetic init mirroring the module's parameter shapes.

    Weights are stored PRE-TRANSPOSED as (in_features, out_features), biases as (1, out)."""
    hidden = list(layers_description) if layers_description else []
    dims = [in_ch] + hidden + [num_classes]
    params = []
    for d_in, d_out in zip(dims[:-1], dims[1:]):
        key, kw, kb = jax.random.split(key, 3)
        bound = 1.0 / (d_in ** 0.5)
        w = jax.random.uniform(kw, (d_in, d_out), jnp.float32, -bound, bound)
        b = jax.random.uniform(kb, (1, d_out), jnp.float32, -bound, bound)
        params.append((w, b))
    return params


def prepare_params(params, compute_dtype=None):
    """One-time parameter preparation (do this at init, not per call).

    * Hidden out-dims are zero-padded to multiples of 128 (lane-dense MXU tiles); the
      FINAL logit dim is left exact so the kernel writes (B, num_classes) directly.
    * The first layer's in-dim is left unpadded (matches x as-is in HBM) unless the
      weight is large, in which case it is padded to a 128 multiple for K-tiling.
    * compute_dtype=bf16 halves weight bytes and is a win on ALL generations (v5e/v6e/v7x
      MXUs do bf16 x bf16 -> f32 natively); biases stay f32 (added to the f32 accumulator).
    Zero padding is numerically neutral (padded hidden units are exactly 0 through ReLU).
    """
    in_ch = params[0][0].shape[0]
    num_classes = params[-1][0].shape[1]
    cdt = jnp.dtype(compute_dtype) if compute_dtype is not None else jnp.dtype(params[0][0].dtype)
    cbytes = cdt.itemsize
    num_layers = len(params)

    prepared = []
    prev_out_p = None
    for idx, (w, b) in enumerate(params):
        d_in, d_out = w.shape
        if idx == 0:
            big = d_in * _round_up(d_out, _LANE) * cbytes > _BIG_FIRST_LAYER_BYTES
            d_in_p = _round_up(d_in, _LANE) if big else d_in
        else:
            d_in_p = prev_out_p               # matches previous layer's padded out-dim
        d_out_p = d_out if idx == num_layers - 1 else _round_up(d_out, _LANE)
        w_p = jnp.pad(w, ((0, d_in_p - d_in), (0, d_out_p - d_out))).astype(cdt)
        b_p = jnp.pad(b, ((0, 0), (0, d_out_p - d_out))).astype(jnp.float32)
        prepared.append((w_p, b_p))
        prev_out_p = d_out_p

    return {"layers": prepared, "in_ch": in_ch, "num_classes": num_classes,
            "compute_dtype": cdt}


def classifier_linear_forward(x, prepared, *, tm=None, k_tile=None,
                              vmem_limit_bytes=None, single_buffer_weights=True):
    """ClassifierLinear forward pass (eval mode) with a fused Pallas TPU kernel.

    x        : (B, in_ch) array -- used as-is in HBM (no wrapper pad / cast / slice).
    prepared : output of prepare_params().
    """
    B, D_in = x.shape
    layers = prepared["layers"]
    assert D_in == prepared["in_ch"], (
        f"x has {D_in} features, module expects {prepared['in_ch']}")
    num_layers = len(layers)
    C = prepared["num_classes"]
    cdt = prepared["compute_dtype"]
    cbytes = jnp.dtype(cdt).itemsize
    out_dtype = x.dtype
    xbytes = jnp.dtype(x.dtype).itemsize
    obytes = jnp.dtype(out_dtype).itemsize

    d0_p, h0_out = layers[0][0].shape
    budget = _vmem_budget_bytes()

    # Resident parameter bytes (constant-index weights single-buffered when supported).
    nbuf_w = 1 if single_buffer_weights else 2
    resident = sum(w.size * cbytes + b.size * 4 for w, b in layers) * nbuf_w

    # Stream the first layer's weight over a reduction grid axis when resident weights
    # would eat too much VMEM (e.g. an 8192x4096 bf16 first layer on v7x).
    if (k_tile is None and resident > budget // 3
            and d0_p % _LANE == 0 and d0_p > _LANE):
        for cand in (512, 256, 128):
            if d0_p % cand == 0:
                k_tile = cand
                break
    use_k = k_tile is not None
    if use_k:
        assert d0_p % k_tile == 0 and k_tile % _LANE == 0, \
            "k_tile must divide the (padded) first-layer in-dim and be a multiple of 128"
        resident -= layers[0][0].size * cbytes * nbuf_w
        resident += 2 * k_tile * h0_out * cbytes          # streamed, double-buffered w0 tiles
    # TODO(synk): later layers are still held resident; a huge *hidden* layer would need its
    # own K/N tiling.

    # x is only feature-padded when the first layer's in-dim was 128-padded (big-head path,
    # where the pad is negligible vs. the weight streaming it enables).  Small heads keep x
    # completely untouched in HBM.
    if D_in != d0_p:
        x = jnp.pad(x, ((0, 0), (0, d0_p - D_in)))
    x_cols = d0_p

    # Per-batch-row VMEM: double-buffered x / out tiles + intermediate activations
    # (f32 accumulators plus their compute-dtype copies).
    per_row = 2 * (k_tile if use_k else x_cols) * xbytes + 2 * C * obytes
    per_row += sum(w.shape[1] * (4 + cbytes) for w, _ in layers)
    avail = max(per_row, budget - resident - _SLACK)
    tm_auto = max(8, min(1024, (avail // per_row) // 8 * 8))
    if tm is None:
        tm = tm_auto
    tm_eff = max(8, min((tm // 8) * 8, _round_up(B, 8), tm_auto))

    if vmem_limit_bytes is None:
        vmem_limit_bytes = int(min(budget,
                                   max(resident + tm_eff * per_row + (8 << 20), 32 << 20)))

    grid_bt = pl.cdiv(B, tm_eff)
    flat = [p for wb in layers for p in wb]

    def _resident_spec(shape, single):
        imap = (lambda i, k: (0, 0)) if use_k else (lambda i: (0, 0))
        if single:
            # Constant block index across the grid -> double-buffering is pure VMEM waste.
            return pl.BlockSpec(shape, imap, pipeline_mode=pl.Buffered(1))
        return pl.BlockSpec(shape, imap)

    def _build(single, limit):
        if use_k:
            grid = (grid_bt, d0_p // k_tile)
            in_specs = [pl.BlockSpec((tm_eff, k_tile), lambda i, k: (i, k)),   # x: batch+K tiled
                        pl.BlockSpec((k_tile, h0_out), lambda i, k: (k, 0)),   # w0: streamed over K
                        _resident_spec(layers[0][1].shape, single)]            # b0: resident
            for w, b in layers[1:]:
                in_specs += [_resident_spec(w.shape, single),
                             _resident_spec(b.shape, single)]
            out_spec = pl.BlockSpec((tm_eff, C), lambda i, k: (i, 0))
            scratch = [pltpu.VMEM((tm_eff, h0_out), jnp.float32)]              # f32 accumulator
            dim_sem = ("parallel", "arbitrary")                                # reduction axis last
            kern = _make_ktiled_kernel(num_layers)
        else:
            grid = (grid_bt,)
            in_specs = [pl.BlockSpec((tm_eff, x_cols), lambda i: (i, 0))]      # x: batch tiled
            for w, b in layers:
                in_specs += [_resident_spec(w.shape, single),
                             _resident_spec(b.shape, single)]
            out_spec = pl.BlockSpec((tm_eff, C), lambda i: (i, 0))             # exact (B, C) output
            scratch = []
            dim_sem = ("parallel",)
            kern = _make_fused_kernel(num_layers)
        return pl.pallas_call(
            kern,
            out_shape=jax.ShapeDtypeStruct((B, C), out_dtype),
            grid_spec=pltpu.PrefetchScalarGridSpec(
                num_scalar_prefetch=0,
                grid=grid,
                in_specs=in_specs,
                out_specs=out_spec,
                scratch_shapes=scratch),
            compiler_params=pltpu.CompilerParams(
                dimension_semantics=dim_sem,
                vmem_limit_bytes=int(limit)),
        )

    if single_buffer_weights:
        try:
            return _build(True, vmem_limit_bytes)(x, *flat)
        except Exception:
            # pipeline_mode=pl.Buffered(1) unsupported on this backend -> fall back to the
            # default double-buffering of the constant-index weights (bigger VMEM limit).
            vmem_limit_bytes = min(budget, vmem_limit_bytes + resident)
    return _build(False, vmem_limit_bytes)(x, *flat)


def _reference_forward(x, params):
    """Pure-JAX reference of the module's forward (eval mode)."""
    h = x
    for w, b in params[:-1]:
        h = jnp.maximum(h @ w + b, 0.0)
    w, b = params[-1]
    return h @ w + b


if __name__ == "__main__":
    # Small shapes consistent with the module: ClassifierLinear(in_ch=32, num_classes=2,
    # layers_description=(32,), dropout_rate=0.1) in eval mode.  B=10 exercises the
    # partial-batch-tile (clipped block) path with no wrapper-side padding.
    B, D_IN, NUM_CLASSES = 10, 32, 2
    LAYERS = (32,)

    key = jax.random.PRNGKey(0)
    kx, kp, kx2, kp2 = jax.random.split(key, 4)
    x = jax.random.normal(kx, (B, D_IN), dtype=jnp.float32)
    params = init_classifier_linear_params(kp, D_IN, LAYERS, NUM_CLASSES)
    ref = _reference_forward(x, params)

    # f32 resident-weight path (matches reference).
    prep_f32 = prepare_params(params)
    out = jax.block_until_ready(classifier_linear_forward(x, prep_f32))
    assert out.shape == (B, NUM_CLASSES)
    assert jnp.allclose(out, ref, atol=1e-4, rtol=1e-4), "f32 kernel mismatch vs reference"

    # bf16 compute path: x stays f32 in HBM, cast + f32 MXU accumulation happen in-kernel.
    prep_bf16 = prepare_params(params, compute_dtype=jnp.bfloat16)
    out_bf16 = jax.block_until_ready(classifier_linear_forward(x, prep_bf16))
    assert out_bf16.shape == (B, NUM_CLASSES)
    assert jnp.allclose(out_bf16, ref, atol=1.5e-1, rtol=5e-2), "bf16 kernel mismatch vs reference"

    # K-tiled (streamed first-layer weight) path, forced via k_tile to validate the
    # accumulator / pl.when init-finalize plumbing at a modest size.
    B2, D2, H2 = 64, 512, (256,)
    x2 = jax.random.normal(kx2, (B2, D2), dtype=jnp.float32)
    params2 = init_classifier_linear_params(kp2, D2, H2, NUM_CLASSES)
    prep2 = prepare_params(params2)
    out_res = jax.block_until_ready(classifier_linear_forward(x2, prep2))
    out_kt = jax.block_until_ready(classifier_linear_forward(x2, prep2, k_tile=128))
    assert out_kt.shape == (B2, NUM_CLASSES)
    assert jnp.allclose(out_kt, out_res, atol=1e-4, rtol=1e-4), "K-tiled path != resident path"
    assert jnp.allclose(out_res, _reference_forward(x2, params2), atol=1e-2, rtol=1e-2), \
        "resident path mismatch vs reference"

    print("KERNEL_OK")
</pallas_src>

<mosaic_0001>
module attributes {stable_mosaic.version = 11 : i64} {
  func.func @kernel(%arg0: i32, %arg1: memref<16x32xf32, #tpu.memory_space<vmem>>, %arg2: memref<32x128xf32, #tpu.memory_space<vmem>>, %arg3: memref<1x128xf32, #tpu.memory_space<vmem>>, %arg4: memref<128x2xf32, #tpu.memory_space<vmem>>, %arg5: memref<1x2xf32, #tpu.memory_space<vmem>>, %arg6: memref<16x2xf32, #tpu.memory_space<vmem>>) attributes {dimension_semantics = [#tpu.dimension_semantics<parallel>], iteration_bounds = array<i64: 1>, scalar_prefetch = 0 : i64, scratch_operands = 0 : i64, tpu.core_type = #tpu.core_type<tc>, window_params = [{transform_indices = @transform_0, window_bounds = array<i64: 16, 32>}, {pipeline_mode = #tpu.pipeline_mode<synchronous>, transform_indices = @transform_1, window_bounds = array<i64: 32, 128>}, {pipeline_mode = #tpu.pipeline_mode<synchronous>, transform_indices = @transform_2, window_bounds = array<i64: 1, 128>}, {pipeline_mode = #tpu.pipeline_mode<synchronous>, transform_indices = @transform_3, window_bounds = array<i64: 128, 2>}, {pipeline_mode = #tpu.pipeline_mode<synchronous>, transform_indices = @transform_4, window_bounds = array<i64: 1, 2>}, {transform_indices = @transform_5, window_bounds = array<i64: 16, 2>}]} {
    %c0 = arith.constant 0 : index
    %c0_0 = arith.constant 0 : index
    %0 = vector.load %arg1[%c0, %c0_0] : memref<16x32xf32, #tpu.memory_space<vmem>>, vector<16x32xf32>
    %c0_1 = arith.constant 0 : index
    %c0_2 = arith.constant 0 : index
    %1 = vector.load %arg2[%c0_1, %c0_2] : memref<32x128xf32, #tpu.memory_space<vmem>>, vector<32x128xf32>
    %c0_3 = arith.constant 0 : index
    %c0_4 = arith.constant 0 : index
    %2 = vector.load %arg3[%c0_3, %c0_4] : memref<1x128xf32, #tpu.memory_space<vmem>>, vector<1x128xf32>
    %cst = arith.constant dense<0.000000e+00> : vector<16x128xf32>
    %3 = tpu.matmul %0, %1, %cst {dimension_numbers = #tpu.dot_dimension_numbers<[1], [0], [0], [1], [0, 0, 1, 1], [], []>} : vector<16x32xf32>, vector<32x128xf32>, vector<16x128xf32> -> vector<16x128xf32>
    %4 = vector.broadcast %2 : vector<1x128xf32> to vector<16x128xf32>
    %5 = arith.addf %3, %4 : vector<16x128xf32>
    %cst_5 = arith.constant 0.000000e+00 : f32
    %6 = vector.broadcast %cst_5 : f32 to vector<16x128xf32>
    %7 = arith.maximumf %5, %6 : vector<16x128xf32>
    %c0_6 = arith.constant 0 : index
    %c0_7 = arith.constant 0 : index
    %8 = vector.load %arg4[%c0_6, %c0_7] : memref<128x2xf32, #tpu.memory_space<vmem>>, vector<128x2xf32>
    %c0_8 = arith.constant 0 : index
    %c0_9 = arith.constant 0 : index
    %9 = vector.load %arg5[%c0_8, %c0_9] : memref<1x2xf32, #tpu.memory_space<vmem>>, vector<1x2xf32>
    %cst_10 = arith.constant dense<0.000000e+00> : vector<16x2xf32>
    %10 = tpu.matmul %7, %8, %cst_10 {dimension_numbers = #tpu.dot_dimension_numbers<[1], [0], [0], [1], [0, 0, 1, 1], [], []>} : vector<16x128xf32>, vector<128x2xf32>, vector<16x2xf32> -> vector<16x2xf32>
    %11 = vector.broadcast %9 : vector<1x2xf32> to vector<16x2xf32>
    %12 = arith.addf %10, %11 : vector<16x2xf32>
    %c0_11 = arith.constant 0 : index
    %c0_12 = arith.constant 0 : index
    %13 = vector.load %arg6[%c0_11, %c0_12] : memref<16x2xf32, #tpu.memory_space<vmem>>, vector<16x2xf32>
    tpu.vector_store %arg6[%c0_11, %c0_12], %12 {strides = array<i32>} : memref<16x2xf32, #tpu.memory_space<vmem>>, vector<16x2xf32>,
    return
  }
  func.func @transform_0(%arg0: i32) -> (i32, i32) {
    %c0_i32 = arith.constant 0 : i32
    %c0_i32_0 = arith.constant 0 : i32
    return %arg0, %c0_i32 : i32, i32
  }
  func.func @transform_1(%arg0: i32) -> (i32, i32) {
    %c0_i32 = arith.constant 0 : i32
    %c0_i32_0 = arith.constant 0 : i32
    %c0_i32_1 = arith.constant 0 : i32
    return %c0_i32, %c0_i32_0 : i32, i32
  }
  func.func @transform_2(%arg0: i32) -> (i32, i32) {
    %c0_i32 = arith.constant 0 : i32
    %c0_i32_0 = arith.constant 0 : i32
    %c0_i32_1 = arith.constant 0 : i32
    return %c0_i32, %c0_i32_0 : i32, i32
  }
  func.func @transform_3(%arg0: i32) -> (i32, i32) {
    %c0_i32 = arith.constant 0 : i32
    %c0_i32_0 = arith.constant 0 : i32
    %c0_i32_1 = arith.constant 0 : i32
    return %c0_i32, %c0_i32_0 : i32, i32
  }
  func.func @transform_4(%arg0: i32) -> (i32, i32) {
    %c0_i32 = arith.constant 0 : i32
    %c0_i32_0 = arith.constant 0 : i32
    %c0_i32_1 = arith.constant 0 : i32
    return %c0_i32, %c0_i32_0 : i32, i32
  }
  func.func @transform_5(%arg0: i32) -> (i32, i32) {
    %c0_i32 = arith.constant 0 : i32
    %c0_i32_0 = arith.constant 0 : i32
    return %arg0, %c0_i32 : i32, i32
  }
}

module attributes {stable_mosaic.version = 11 : i64} {
  func.func @kernel(%arg0: i32, %arg1: memref<16x32xf32, #tpu.memory_space<vmem>>, %arg2: memref<32x128xf32, #tpu.memory_space<vmem>>, %arg3: memref<1x128xf32, #tpu.memory_space<vmem>>, %arg4: memref<128x2xf32, #tpu.memory_space<vmem>>, %arg5: memref<1x2xf32, #tpu.memory_space<vmem>>, %arg6: memref<16x2xf32, #tpu.memory_space<vmem>>) attributes {dimension_semantics = [#tpu.dimension_semantics<parallel>], iteration_bounds = array<i64: 1>, scalar_prefetch = 0 : i64, scratch_operands = 0 : i64, tpu.core_type = #tpu.core_type<tc>, window_params = [{transform_indices = @transform_0, window_bounds = array<i64: 16, 32>}, {pipeline_mode = #tpu.pipeline_mode<synchronous>, transform_indices = @transform_1, window_bounds = array<i64: 32, 128>}, {pipeline_mode = #tpu.pipeline_mode<synchronous>, transform_indices = @transform_2, window_bounds = array<i64: 1, 128>}, {pipeline_mode = #tpu.pipeline_mode<synchronous>, transform_indices = @transform_3, window_bounds = array<i64: 128, 2>}, {pipeline_mode = #tpu.pipeline_mode<synchronous>, transform_indices = @transform_4, window_bounds = array<i64: 1, 2>}, {transform_indices = @transform_5, window_bounds = array<i64: 16, 2>}]} {
    %c0 = arith.constant 0 : index
    %c0_0 = arith.constant 0 : index
    %0 = vector.load %arg1[%c0, %c0_0] : memref<16x32xf32, #tpu.memory_space<vmem>>, vector<16x32xf32>
    %c0_1 = arith.constant 0 : index
    %c0_2 = arith.constant 0 : index
    %1 = vector.load %arg2[%c0_1, %c0_2] : memref<32x128xf32, #tpu.memory_space<vmem>>, vector<32x128xf32>
    %c0_3 = arith.constant 0 : index
    %c0_4 = arith.constant 0 : index
    %2 = vector.load %arg3[%c0_3, %c0_4] : memref<1x128xf32, #tpu.memory_space<vmem>>, vector<1x128xf32>
    %cst = arith.constant dense<0.000000e+00> : vector<16x128xf32>
    %3 = tpu.matmul %0, %1, %cst {dimension_numbers = #tpu.dot_dimension_numbers<[1], [0], [0], [1], [0, 0, 1, 1], [], []>} : vector<16x32xf32>, vector<32x128xf32>, vector<16x128xf32> -> vector<16x128xf32>
    %4 = vector.broadcast %2 : vector<1x128xf32> to vector<16x128xf32>
    %5 = arith.addf %3, %4 : vector<16x128xf32>
    %cst_5 = arith.constant 0.000000e+00 : f32
    %6 = vector.broadcast %cst_5 : f32 to vector<16x128xf32>
    %7 = arith.maximumf %5, %6 : vector<16x128xf32>
    %c0_6 = arith.constant 0 : index
    %c0_7 = arith.constant 0 : index
    %8 = vector.load %arg4[%c0_6, %c0_7] : memref<128x2xf32, #tpu.memory_space<vmem>>, vector<128x2xf32>
    %c0_8 = arith.constant 0 : index
    %c0_9 = arith.constant 0 : index
    %9 = vector.load %arg5[%c0_8, %c0_9] : memref<1x2xf32, #tpu.memory_space<vmem>>, vector<1x2xf32>
    %cst_10 = arith.constant dense<0.000000e+00> : vector<16x2xf32>
    %10 = tpu.matmul %7, %8, %cst_10 {dimension_numbers = #tpu.dot_dimension_numbers<[1], [0], [0], [1], [0, 0, 1, 1], [], []>} : vector<16x128xf32>, vector<128x2xf32>, vector<16x2xf32> -> vector<16x2xf32>
    %11 = vector.broadcast %9 : vector<1x2xf32> to vector<16x2xf32>
    %12 = arith.addf %10, %11 : vector<16x2xf32>
    %c0_11 = arith.constant 0 : index
    %c0_12 = arith.constant 0 : index
    %13 = vector.load %arg6[%c0_11, %c0_12] : memref<16x2xf32, #tpu.memory_space<vmem>>, vector<16x2xf32>
    tpu.vector_store %arg6[%c0_11, %c0_12], %12 {strides = array<i32>} : memref<16x2xf32, #tpu.memory_space<vmem>>, vector<16x2xf32>,
    return
  }
  func.func @transform_0(%arg0: i32) -> (i32, i32) {
    %c0_i32 = arith.constant 0 : i32
    %c0_i32_0 = arith.constant 0 : i32
    return %arg0, %c0_i32 : i32, i32
  }
  func.func @transform_1(%arg0: i32) -> (i32, i32) {
    %c0_i32 = arith.constant 0 : i32
    %c0_i32_0 = arith.constant 0 : i32
    %c0_i32_1 = arith.constant 0 : i32
    return %c0_i32, %c0_i32_0 : i32, i32
  }
  func.func @transform_2(%arg0: i32) -> (i32, i32) {
    %c0_i32 = arith.constant 0 : i32
    %c0_i32_0 = arith.constant 0 : i32
    %c0_i32_1 = arith.constant 0 : i32
    return %c0_i32, %c0_i32_0 : i32, i32
  }
  func.func @transform_3(%arg0: i32) -> (i32, i32) {
    %c0_i32 = arith.constant 0 : i32
    %c0_i32_0 = arith.constant 0 : i32
    %c0_i32_1 = arith.constant 0 : i32
    return %c0_i32, %c0_i32_0 : i32, i32
  }
  func.func @transform_4(%arg0: i32) -> (i32, i32) {
    %c0_i32 = arith.constant 0 : i32
    %c0_i32_0 = arith.constant 0 : i32
    %c0_i32_1 = arith.constant 0 : i32
    return %c0_i32, %c0_i32_0 : i32, i32
  }
  func.func @transform_5(%arg0: i32) -> (i32, i32) {
    %c0_i32 = arith.constant 0 : i32
    %c0_i32_0 = arith.constant 0 : i32
    return %arg0, %c0_i32 : i32, i32
  }
}

</mosaic_0001>

<bundles_post_ra>
// kernel: tpu_custom_call.1
= control target key start
LH: loop header
LB: loop body
LE: loop exit
PB: predicated region body
PF: predicated region fallthrough
CT: control target
= control target key end

     0   :  { %vm33_vm0 = vcmask 261120   ;;  %vm215_vm1 = vcmask 15360   ;;  %s446_s1 = inlined_call_operand.vmem [shape: f32[32,128], index: 1, kind: input, shape index: {}]   ;;  %s447_s0 = inlined_call_operand.vmem [shape: f32[10,32], index: 0, kind: input, shape index: {}]   ;;  %s448_s3 = inlined_call_operand.vmem [shape: f32[128,2], index: 3, kind: input, shape index: {}]   ;;  %s449_s2 = inlined_call_operand.vmem [shape: f32[1,128], index: 2, kind: input, shape index: {}]   ;;  %s450_s4 = inlined_call_operand.vmem [shape: f32[1,2], index: 4, kind: input, shape index: {}]   ;;  %s451_s5 = inlined_call_operand.vmem [shape: f32[10,2], index: 5, kind: output, shape index: {}]  }
   0x1   :  { %v22_v0 = vld [vmem:[%s446_s1] sm:$0xff]  ;;  %v23_v1 = vld [vmem:[%s446_s1 + $0x8] sm:$0xff]  ;;  %v24_v2 = vld [vmem:[%s446_s1 + $0x10] sm:$0xff] }
   0x2   :  { %v296_v3 = vpack.c.bf16 %v23_v1, %v22_v0  ;;  %v25_v4 = vld [vmem:[%s446_s1 + $0x18] sm:$0xff]  ;;  %v20_v5 = vld [vmem:[%s447_s0] sm:$0xff]  ;;  %v118_v8 = vld [vmem:[%s448_s3 + $0x8] sm:$0xff] }
   0x3   :  { %v300_v6 = vpack.c.bf16 %v25_v4, %v24_v2  ;;  %258 = vmatprep.mubr.msk.f32.mxu0 %vm33_vm0, %v20_v5  ;;  %v117_v7 = vld [vmem:[%s448_s3] sm:$0xff]  ;;  %v119_v9 = vld [vmem:[%s448_s3 + $0x10] sm:$0xff]  ;;  %v120_v11 = vld [vmem:[%s448_s3 + $0x18] sm:$0xff] }
   0x4   :  { %297 = vmatprep.subr.bf16.mxu0 %v296_v3  ;;  %v304_v10 = vpack.c.bf16 %v118_v8, %v117_v7  ;;  %v308_v12 = vpack.c.bf16 %v120_v11, %v119_v9  ;;  %v121_v13 = vld [vmem:[%s448_s3 + $0x20] sm:$0xff]  ;;  %v122_v14 = vld [vmem:[%s448_s3 + $0x28] sm:$0xff]  ;;  %v123_v17 = vld [vmem:[%s448_s3 + $0x30] sm:$0xff] }
   0x5   :  { %299 = vmatpush3.bf16.msra.mxu0 %v296_v3  ;;  %v312_v15 = vpack.c.bf16 %v122_v14, %v121_v13  ;;  %v21_v16 = vld [vmem:[%s447_s0 + $0x8] sm:$0xff]  ;;  %v124_v18 = vld [vmem:[%s448_s3 + $0x38] sm:$0xff]  ;;  %v125_v20 = vld [vmem:[%s448_s3 + $0x40] sm:$0xff] }
   0x6   :  { %301 = vmatprep.subr.bf16.mxu0 %v300_v6  ;;  %305 = vmatprep.subr.bf16.mxu1 %v304_v10  ;;  %v316_v19 = vpack.c.bf16 %v124_v18, %v123_v17  ;;  %v126_v21 = vld [vmem:[%s448_s3 + $0x48] sm:$0xff]  ;;  %v127_v23 = vld [vmem:[%s448_s3 + $0x50] sm:$0xff]  ;;  %v128_v24 = vld [vmem:[%s448_s3 + $0x58] sm:$0xff] }
   0x7   :  { %307 = vmatpush3.bf16.msra.mxu1 %v304_v10  ;;  %v320_v22 = vpack.c.bf16 %v126_v21, %v125_v20  ;;  %v324_v25 = vpack.c.bf16 %v128_v24, %v127_v23  ;;  %v129_v26 = vld [vmem:[%s448_s3 + $0x60] sm:$0xff]  ;;  %v130_v27 = vld [vmem:[%s448_s3 + $0x68] sm:$0xff]  ;;  %v131_v29 = vld [vmem:[%s448_s3 + $0x70] sm:$0xff] }
   0x8   :  { %309 = vmatprep.subr.bf16.mxu1 %v308_v12  ;;  %v328_v28 = vpack.c.bf16 %v130_v27, %v129_v26  ;;  %v132_v30 = vld [vmem:[%s448_s3 + $0x78] sm:$0xff]  ;;  %v222_v32 = vld [vmem:[%s449_s2] ss:$0 sm:$0xff] }
   0x9   :  { %303 = vmatpush3.bf16.msra.mxu0 %v300_v6  ;;  %v332_v31 = vpack.c.bf16 %v132_v30, %v131_v29  ;;  %v225_v39 = vld [vmem:[%s450_s4] ss:$0 sm:$0xff] }
   0xb   :  { %311 = vmatpush3.bf16.msra.mxu1 %v308_v12 }
   0xc   :  { %259 = vmatmul.mubr.msk.f32.vlgmr.msra.gmra.mrb[0].mxu0 %vm33_vm0, %v21_v16  ;;  %313 = vmatprep.subr.bf16.mxu1 %v312_v15 }
   0xf   :  { %315 = vmatpush3.bf16.msra.mxu1 %v312_v15 }
  0x10   :  { %317 = vmatprep.subr.bf16.mxu1 %v316_v19 }
  0x13   :  { %319 = vmatpush3.bf16.msra.mxu1 %v316_v19 }
  0x14   :  { %321 = vmatprep.subr.bf16.mxu1 %v320_v22 }
  0x17   :  { %323 = vmatpush3.bf16.msra.mxu1 %v320_v22 }
  0x18   :  { %325 = vmatprep.subr.bf16.mxu1 %v324_v25 }
  0x1b   :  { %327 = vmatpush3.bf16.msra.mxu1 %v324_v25 }
  0x1c   :  { %329 = vmatprep.subr.bf16.mxu1 %v328_v28 }
  0x1f   :  { %331 = vmatpush3.bf16.msra.mxu1 %v328_v28 }
  0x20   :  { %333 = vmatprep.subr.bf16.mxu1 %v332_v31 }
  0x23   :  { %335 = vmatpush3.bf16.msra.mxu1 %v332_v31 }
  0xdf   :  { %v260_v33 = vpop.f32.mrb[0].mxu0 }
  0xe0   :  { %v112_v34 = vadd.f32 %v260_v33, %v222_v32  ;;  %v106_v35 = vpop.f32.mrb[1].mxu0 }
  0xe1   :  { %v107_v36 = vadd.f32 %v222_v32, %v106_v35 }
  0xe2   :  { %v116_v38 = vmax.f32 %v112_v34, 0.0 }
  0xe3   :  { %v115_v37 = vmax.f32 %v107_v36, 0.0 }
  0xe5   :  { %293 = vmatprep.mubr.f32.mxu1 %v115_v37 }
  0xe6   :  { %294 = vmatmul.mubr.f32.vlgmr.msra.gmra.mrb[0].mxu1 %v116_v38 }
 0x1b9   :  { %v295_v40 = vpop.f32.mrb[0].mxu1 }
 0x1ba   :  { %v212_v41 = vadd.f32 %v295_v40, %v225_v39  ;;  %v206_v42 = vpop.f32.mrb[1].mxu1 }
 0x1bb   :  { %v207_v43 = vadd.f32 %v225_v39, %v206_v42 }
 0x1bc   :  { %217 = vst.msk [vmem:[%s451_s5 + $0x8] sm:$0xff] %vm215_vm1, %v212_v41 }
 0x1bd   :  { %216 = vst.msk [vmem:[%s451_s5] sm:$0xff] %vm215_vm1, %v207_v43 }

// kernel: tpu_custom_call.1
= control target key start
LH: loop header
LB: loop body
LE: loop exit
PB: predicated region body
PF: predicated region fallthrough
CT: control target
= control target key end

     0   :  { %vm33_vm0 = vcmask 261120   ;;  %vm215_vm1 = vcmask 15360   ;;  %s446_s1 = inlined_call_operand.vmem [shape: f32[32,128], index: 1, kind: input, shape index: {}]   ;;  %s447_s0 = inlined_call_operand.vmem [shape: f32[10,32], index: 0, kind: input, shape index: {}]   ;;  %s448_s3 = inlined_call_operand.vmem [shape: f32[128,2], index: 3, kind: input, shape index: {}]   ;;  %s449_s2 = inlined_call_operand.vmem [shape: f32[1,128], index: 2, kind: input, shape index: {}]   ;;  %s450_s4 = inlined_call_operand.vmem [shape: f32[1,2], index: 4, kind: input, shape index: {}]   ;;  %s451_s5 = inlined_call_operand.vmem [shape: f32[10,2], index: 5, kind: output, shape index: {}]  }
   0x1   :  { %v22_v0 = vld [vmem:[%s446_s1] sm:$0xff]  ;;  %v23_v1 = vld [vmem:[%s446_s1 + $0x8] sm:$0xff]  ;;  %v24_v2 = vld [vmem:[%s446_s1 + $0x10] sm:$0xff] }
   0x2   :  { %v296_v3 = vpack.c.bf16 %v23_v1, %v22_v0  ;;  %v25_v4 = vld [vmem:[%s446_s1 + $0x18] sm:$0xff]  ;;  %v20_v5 = vld [vmem:[%s447_s0] sm:$0xff]  ;;  %v118_v8 = vld [vmem:[%s448_s3 + $0x8] sm:$0xff] }
   0x3   :  { %v300_v6 = vpack.c.bf16 %v25_v4, %v24_v2  ;;  %258 = vmatprep.mubr.msk.f32.mxu0 %vm33_vm0, %v20_v5  ;;  %v117_v7 = vld [vmem:[%s448_s3] sm:$0xff]  ;;  %v119_v9 = vld [vmem:[%s448_s3 + $0x10] sm:$0xff]  ;;  %v120_v11 = vld [vmem:[%s448_s3 + $0x18] sm:$0xff] }
   0x4   :  { %297 = vmatprep.subr.bf16.mxu0 %v296_v3  ;;  %v304_v10 = vpack.c.bf16 %v118_v8, %v117_v7  ;;  %v308_v12 = vpack.c.bf16 %v120_v11, %v119_v9  ;;  %v121_v13 = vld [vmem:[%s448_s3 + $0x20] sm:$0xff]  ;;  %v122_v14 = vld [vmem:[%s448_s3 + $0x28] sm:$0xff]  ;;  %v123_v17 = vld [vmem:[%s448_s3 + $0x30] sm:$0xff] }
   0x5   :  { %299 = vmatpush3.bf16.msra.mxu0 %v296_v3  ;;  %v312_v15 = vpack.c.bf16 %v122_v14, %v121_v13  ;;  %v21_v16 = vld [vmem:[%s447_s0 + $0x8] sm:$0xff]  ;;  %v124_v18 = vld [vmem:[%s448_s3 + $0x38] sm:$0xff]  ;;  %v125_v20 = vld [vmem:[%s448_s3 + $0x40] sm:$0xff] }
   0x6   :  { %301 = vmatprep.subr.bf16.mxu0 %v300_v6  ;;  %305 = vmatprep.subr.bf16.mxu1 %v304_v10  ;;  %v316_v19 = vpack.c.bf16 %v124_v18, %v123_v17  ;;  %v126_v21 = vld [vmem:[%s448_s3 + $0x48] sm:$0xff]  ;;  %v127_v23 = vld [vmem:[%s448_s3 + $0x50] sm:$0xff]  ;;  %v128_v24 = vld [vmem:[%s448_s3 + $0x58] sm:$0xff] }
   0x7   :  { %307 = vmatpush3.bf16.msra.mxu1 %v304_v10  ;;  %v320_v22 = vpack.c.bf16 %v126_v21, %v125_v20  ;;  %v324_v25 = vpack.c.bf16 %v128_v24, %v127_v23  ;;  %v129_v26 = vld [vmem:[%s448_s3 + $0x60] sm:$0xff]  ;;  %v130_v27 = vld [vmem:[%s448_s3 + $0x68] sm:$0xff]  ;;  %v131_v29 = vld [vmem:[%s448_s3 + $0x70] sm:$0xff] }
   0x8   :  { %309 = vmatprep.subr.bf16.mxu1 %v308_v12  ;;  %v328_v28 = vpack.c.bf16 %v130_v27, %v129_v26  ;;  %v132_v30 = vld [vmem:[%s448_s3 + $0x78] sm:$0xff]  ;;  %v222_v32 = vld [vmem:[%s449_s2] ss:$0 sm:$0xff] }
   0x9   :  { %303 = vmatpush3.bf16.msra.mxu0 %v300_v6  ;;  %v332_v31 = vpack.c.bf16 %v132_v30, %v131_v29  ;;  %v225_v39 = vld [vmem:[%s450_s4] ss:$0 sm:$0xff] }
   0xb   :  { %311 = vmatpush3.bf16.msra.mxu1 %v308_v12 }
   0xc   :  { %259 = vmatmul.mubr.msk.f32.vlgmr.msra.gmra.mrb[0].mxu0 %vm33_vm0, %v21_v16  ;;  %313 = vmatprep.subr.bf16.mxu1 %v312_v15 }
   0xf   :  { %315 = vmatpush3.bf16.msra.mxu1 %v312_v15 }
  0x10   :  { %317 = vmatprep.subr.bf16.mxu1 %v316_v19 }
  0x13   :  { %319 = vmatpush3.bf16.msra.mxu1 %v316_v19 }
  0x14   :  { %321 = vmatprep.subr.bf16.mxu1 %v320_v22 }
  0x17   :  { %323 = vmatpush3.bf16.msra.mxu1 %v320_v22 }
  0x18   :  { %325 = vmatprep.subr.bf16.mxu1 %v324_v25 }
  0x1b   :  { %327 = vmatpush3.bf16.msra.mxu1 %v324_v25 }
  0x1c   :  { %329 = vmatprep.subr.bf16.mxu1 %v328_v28 }
  0x1f   :  { %331 = vmatpush3.bf16.msra.mxu1 %v328_v28 }
  0x20   :  { %333 = vmatprep.subr.bf16.mxu1 %v332_v31 }
  0x23   :  { %335 = vmatpush3.bf16.msra.mxu1 %v332_v31 }
  0xdf   :  { %v260_v33 = vpop.f32.mrb[0].mxu0 }
  0xe0   :  { %v112_v34 = vadd.f32 %v260_v33, %v222_v32  ;;  %v106_v35 = vpop.f32.mrb[1].mxu0 }
  0xe1   :  { %v107_v36 = vadd.f32 %v222_v32, %v106_v35 }
  0xe2   :  { %v116_v38 = vmax.f32 %v112_v34, 0.0 }
  0xe3   :  { %v115_v37 = vmax.f32 %v107_v36, 0.0 }
  0xe5   :  { %293 = vmatprep.mubr.f32.mxu1 %v115_v37 }
  0xe6   :  { %294 = vmatmul.mubr.f32.vlgmr.msra.gmra.mrb[0].mxu1 %v116_v38 }
 0x1b9   :  { %v295_v40 = vpop.f32.mrb[0].mxu1 }
 0x1ba   :  { %v212_v41 = vadd.f32 %v295_v40, %v225_v39  ;;  %v206_v42 = vpop.f32.mrb[1].mxu1 }
 0x1bb   :  { %v207_v43 = vadd.f32 %v225_v39, %v206_v42 }
 0x1bc   :  { %217 = vst.msk [vmem:[%s451_s5 + $0x8] sm:$0xff] %vm215_vm1, %v212_v41 }
 0x1bd   :  { %216 = vst.msk [vmem:[%s451_s5] sm:$0xff] %vm215_vm1, %v207_v43 }

</bundles_post_ra>
